<compile_context>
chip_gen: v5e
topology: v5e:2x2
jax: 0.10.0
libtpu: 0.0.40
codegen_flags: <defaults>
</compile_context>

<pallas_src>
import numpy as np
import jax
import jax.numpy as jnp
from jax.experimental import pallas as pl
from jax.experimental.pallas import tpu as pltpu

T = 3     # conv in_channels
L = 4     # conv input length -> conv output length = 3 ; flatten -> 6*3 = 18
TB = 128  # batch tile (lane width). Must be 128: biases are stored pre-broadcast
          # across 128 lanes in the parameter slab.

# Parameter-slab row offsets (all multiples of 8 so every kernel slice starts on
# a sublane-tile boundary).
WC_R, BC_R = 0, 24        # conv-as-matmul weight (18,12) / bias (18,TB)
W1_R, B1_R = 48, 64       # Linear(18,16) weight (16,18) / bias (16,TB)
W2_R, B2_R = 80, 88       # Linear(16,2)  weight (2,16)  / bias (2,TB)
W3X_R, W3Y_R, B3_R = 96, 104, 112   # Linear(6,3) split weights / bias (8-row padded)
SLAB_ROWS = 120


# ----------------------------- Pallas kernel --------------------------------
def beamsnet_kernel(xT_ref, yfT_ref, w_ref, o_ref):
    # Static, aligned views into the resident parameter slab (no runtime cost).
    wc  = w_ref[WC_R:WC_R + 18, 0:12]        # (18, 12) conv lowered to matmul
    bc  = w_ref[BC_R:BC_R + 18, :]           # (18, TB) pre-broadcast bias
    w1  = w_ref[W1_R:W1_R + 16, 0:18]        # (16, 18)
    b1  = w_ref[B1_R:B1_R + 16, :]           # (16, TB)
    w2  = w_ref[W2_R:W2_R + 2, 0:16]         # (2, 16)
    b2  = w_ref[B2_R:B2_R + 2, :]            # (2, TB)
    w3x = w_ref[W3X_R:W3X_R + 8, 0:4]        # (8, 4)  rows 3:8 are zero
    w3y = w_ref[W3Y_R:W3Y_R + 8, 0:2]        # (8, 2)  rows 3:8 are zero
    b3  = w_ref[B3_R:B3_R + 8, :]            # (8, TB) rows 3:8 are zero

    # Conv1d + Tanh (feature-major: h = tanh(Wc @ yflat^T + bc)) -> (18, TB)
    h = jnp.tanh(jnp.dot(wc, yfT_ref[...],
                         preferred_element_type=jnp.float32) + bc)
    # FC_ConvToFc: Linear(18,16)+ReLU, Linear(16,2)+ReLU
    z = jnp.maximum(jnp.dot(w1, h, preferred_element_type=jnp.float32) + b1, 0.0)
    z = jnp.maximum(jnp.dot(w2, z, preferred_element_type=jnp.float32) + b2, 0.0)
    # FC_output on column_stack((x, z)):
    #   W3 @ [x^T ; z] + b3 == W3[:, :4] @ x^T + W3[:, 4:] @ z + b3
    # (rows 3:8 of the (8, TB) output tile stay exactly zero -> full-tile vst)
    o_ref[...] = (jnp.dot(w3x, xT_ref[...], preferred_element_type=jnp.float32)
                  + jnp.dot(w3y, z, preferred_element_type=jnp.float32)
                  + b3)


# ------------------------------- wrapper -------------------------------------
def beamsnet_v2_forward(x, y, slab):
    """x: (N, 4), y: (N, T, L). slab: (SLAB_ROWS, 128) packed parameters."""
    assert TB == 128
    n = x.shape[0]
    npad = -(-n // TB) * TB

    # Feature-major (batch-on-lanes) activations; pure layout glue.
    xT = x.T                               # (4, n)
    yfT = y.reshape(n, T * L).T            # (12, n) row-major NCL flatten, transposed
    if npad != n:
        xT = jnp.pad(xT, ((0, 0), (0, npad - n)))
        yfT = jnp.pad(yfT, ((0, 0), (0, npad - n)))

    flops_per_elem = 2 * (18 * 12 + 16 * 18 + 2 * 16 + 8 * 4 + 8 * 2)
    cost = pl.CostEstimate(
        flops=flops_per_elem * npad,
        transcendentals=18 * npad,
        bytes_accessed=4 * (npad * (4 + 12 + 8) + SLAB_ROWS * 128))

    out = pl.pallas_call(
        beamsnet_kernel,
        out_shape=jax.ShapeDtypeStruct((8, npad), jnp.float32),
        grid=(npad // TB,),
        in_specs=[
            pl.BlockSpec((4, TB), lambda i: (0, i)),           # x^T, batch-tiled
            pl.BlockSpec((12, TB), lambda i: (0, i)),          # yflat^T, batch-tiled
            pl.BlockSpec((SLAB_ROWS, 128), lambda i: (0, 0)),  # weights resident
        ],
        out_specs=pl.BlockSpec((8, TB), lambda i: (0, i)),
        compiler_params=pltpu.CompilerParams(
            dimension_semantics=("parallel",)),                # megacore on v7x
        cost_estimate=cost,
    )(xT, yfT, slab)

    return out[:3, :n].T   # (n, 3)


# ------------------------- parameter construction ---------------------------
def kaiming_uniform(key, shape, fan_in):
    bound = float(np.sqrt(6.0 / fan_in))  # torch kaiming_uniform_ default gain
    return jax.random.uniform(key, shape, jnp.float32, -bound, bound)


def default_bias(key, shape, fan_in):
    bound = float(1.0 / np.sqrt(fan_in))  # torch Conv1d/Linear default bias init
    return jax.random.uniform(key, shape, jnp.float32, -bound, bound)


def init_params(key):
    ks = jax.random.split(key, 8)
    p = {}
    p["conv_w"] = kaiming_uniform(ks[0], (6, T, 2), fan_in=T * 2)   # (out, in, k)
    p["conv_b"] = default_bias(ks[1], (6,), fan_in=T * 2)
    p["w1"] = kaiming_uniform(ks[2], (16, 18), fan_in=18)
    p["b1"] = default_bias(ks[3], (16,), fan_in=18)
    p["w2"] = kaiming_uniform(ks[4], (2, 16), fan_in=16)
    p["b2"] = default_bias(ks[5], (2,), fan_in=16)
    p["w3"] = kaiming_uniform(ks[6], (3, 6), fan_in=6)
    p["b3"] = default_bias(ks[7], (3,), fan_in=6)
    return p


def make_param_slab(p):
    """Pack all torch-layout params into one (SLAB_ROWS, 128) f32 slab (glue only)."""
    conv_w = np.asarray(p["conv_w"], np.float32)   # (6, 3, 2)
    conv_b = np.asarray(p["conv_b"], np.float32)   # (6,)
    # Lower Conv1d(k=2, stride=1) + flatten into a single (18, 12) feature-major matmul:
    #   h[oc*3 + t, n] = sum_{ic,k} conv_w[oc,ic,k] * yflat[n, ic*4 + t + k] + conv_b[oc]
    wc = np.zeros((18, 12), np.float32)
    for oc in range(6):
        for t in range(L - 1):
            for ic in range(T):
                for k in range(2):
                    wc[oc * (L - 1) + t, ic * L + t + k] = conv_w[oc, ic, k]
    bc = np.repeat(conv_b, L - 1)                  # (18,)

    w1 = np.asarray(p["w1"], np.float32); b1 = np.asarray(p["b1"], np.float32)
    w2 = np.asarray(p["w2"], np.float32); b2 = np.asarray(p["b2"], np.float32)
    w3 = np.asarray(p["w3"], np.float32); b3 = np.asarray(p["b3"], np.float32)

    slab = np.zeros((SLAB_ROWS, 128), np.float32)
    slab[WC_R:WC_R + 18, 0:12] = wc
    slab[BC_R:BC_R + 18, :] = bc[:, None]          # biases pre-broadcast over lanes
    slab[W1_R:W1_R + 16, 0:18] = w1
    slab[B1_R:B1_R + 16, :] = b1[:, None]
    slab[W2_R:W2_R + 2, 0:16] = w2
    slab[B2_R:B2_R + 2, :] = b2[:, None]
    slab[W3X_R:W3X_R + 3, 0:4] = w3[:, :4]         # rows 3:8 stay zero (output pad)
    slab[W3Y_R:W3Y_R + 3, 0:2] = w3[:, 4:]
    slab[B3_R:B3_R + 3, :] = b3[:, None]
    return jnp.asarray(slab)


# ------------------------------ plain-JAX reference --------------------------
def reference_forward(x, y, p):
    conv = jnp.stack(
        [jnp.einsum("oik,nik->no", p["conv_w"], y[:, :, t:t + 2])
         for t in range(L - 1)], axis=2) + p["conv_b"][None, :, None]
    h = jnp.tanh(conv).reshape(y.shape[0], -1)          # torch.flatten(y, 1)
    z = jax.nn.relu(h @ p["w1"].T + p["b1"])
    z = jax.nn.relu(z @ p["w2"].T + p["b2"])
    xc = jnp.concatenate([x, z], axis=1)                # torch.column_stack
    return xc @ p["w3"].T + p["b3"]


# ----------------------------------- main ------------------------------------
if __name__ == "__main__":
    key = jax.random.PRNGKey(0)
    kx, ky, kparam = jax.random.split(key, 3)

    N = 256  # two 128-wide batch tiles -> exercises the pipelined batch grid
    x = jax.random.normal(kx, (N, 4), jnp.float32)       # DVL beams input
    y = jax.random.normal(ky, (N, T, L), jnp.float32)    # Conv1d input (NCL)

    params = init_params(kparam)
    slab = make_param_slab(params)

    out = jax.block_until_ready(beamsnet_v2_forward(x, y, slab))
    ref = jax.block_until_ready(reference_forward(x, y, params))
    assert out.shape == (N, 3)
    np.testing.assert_allclose(np.asarray(out), np.asarray(ref),
                               rtol=1e-4, atol=1e-4)
    print("KERNEL_OK")
</pallas_src>

<mosaic_0001>
module attributes {stable_mosaic.version = 11 : i64} {
  func.func @beamsnet_kernel(%arg0: i32, %arg1: memref<4x128xf32, #tpu.memory_space<vmem>>, %arg2: memref<12x128xf32, #tpu.memory_space<vmem>>, %arg3: memref<120x128xf32, #tpu.memory_space<vmem>>, %arg4: memref<8x128xf32, #tpu.memory_space<vmem>>) attributes {dimension_semantics = [#tpu.dimension_semantics<parallel>], iteration_bounds = array<i64: 2>, scalar_prefetch = 0 : i64, scratch_operands = 0 : i64, tpu.core_type = #tpu.core_type<tc>, window_params = [{transform_indices = @transform_0, window_bounds = array<i64: 4, 128>}, {transform_indices = @transform_1, window_bounds = array<i64: 12, 128>}, {pipeline_mode = #tpu.pipeline_mode<synchronous>, transform_indices = @transform_2, window_bounds = array<i64: 120, 128>}, {transform_indices = @transform_3, window_bounds = array<i64: 8, 128>}]} {
    %c0 = arith.constant 0 : index
    %c0_0 = arith.constant 0 : index
    %0 = vector.load %arg3[%c0, %c0_0] : memref<120x128xf32, #tpu.memory_space<vmem>>, vector<18x12xf32>
    %c24 = arith.constant 24 : index
    %c0_1 = arith.constant 0 : index
    %1 = vector.load %arg3[%c24, %c0_1] : memref<120x128xf32, #tpu.memory_space<vmem>>, vector<18x128xf32>
    %c48 = arith.constant 48 : index
    %c0_2 = arith.constant 0 : index
    %2 = vector.load %arg3[%c48, %c0_2] : memref<120x128xf32, #tpu.memory_space<vmem>>, vector<16x18xf32>
    %c64 = arith.constant 64 : index
    %c0_3 = arith.constant 0 : index
    %3 = vector.load %arg3[%c64, %c0_3] : memref<120x128xf32, #tpu.memory_space<vmem>>, vector<16x128xf32>
    %c80 = arith.constant 80 : index
    %c0_4 = arith.constant 0 : index
    %4 = vector.load %arg3[%c80, %c0_4] : memref<120x128xf32, #tpu.memory_space<vmem>>, vector<2x16xf32>
    %c88 = arith.constant 88 : index
    %c0_5 = arith.constant 0 : index
    %5 = vector.load %arg3[%c88, %c0_5] : memref<120x128xf32, #tpu.memory_space<vmem>>, vector<2x128xf32>
    %c96 = arith.constant 96 : index
    %c0_6 = arith.constant 0 : index
    %6 = vector.load %arg3[%c96, %c0_6] : memref<120x128xf32, #tpu.memory_space<vmem>>, vector<8x4xf32>
    %c104 = arith.constant 104 : index
    %c0_7 = arith.constant 0 : index
    %7 = vector.load %arg3[%c104, %c0_7] : memref<120x128xf32, #tpu.memory_space<vmem>>, vector<8x2xf32>
    %c112 = arith.constant 112 : index
    %c0_8 = arith.constant 0 : index
    %8 = vector.load %arg3[%c112, %c0_8] : memref<120x128xf32, #tpu.memory_space<vmem>>, vector<8x128xf32>
    %c0_9 = arith.constant 0 : index
    %c0_10 = arith.constant 0 : index
    %9 = vector.load %arg2[%c0_9, %c0_10] : memref<12x128xf32, #tpu.memory_space<vmem>>, vector<12x128xf32>
    %cst = arith.constant dense<0.000000e+00> : vector<18x128xf32>
    %10 = tpu.matmul %0, %9, %cst {dimension_numbers = #tpu.dot_dimension_numbers<[1], [0], [0], [1], [0, 0, 1, 1], [], []>} : vector<18x12xf32>, vector<12x128xf32>, vector<18x128xf32> -> vector<18x128xf32>
    %11 = arith.addf %10, %1 : vector<18x128xf32>
    %12 = math.tanh %11 : vector<18x128xf32>
    %cst_11 = arith.constant dense<0.000000e+00> : vector<16x128xf32>
    %13 = tpu.matmul %2, %12, %cst_11 {dimension_numbers = #tpu.dot_dimension_numbers<[1], [0], [0], [1], [0, 0, 1, 1], [], []>} : vector<16x18xf32>, vector<18x128xf32>, vector<16x128xf32> -> vector<16x128xf32>
    %14 = arith.addf %13, %3 : vector<16x128xf32>
    %cst_12 = arith.constant 0.000000e+00 : f32
    %15 = vector.broadcast %cst_12 : f32 to vector<16x128xf32>
    %16 = arith.maximumf %14, %15 : vector<16x128xf32>
    %cst_13 = arith.constant dense<0.000000e+00> : vector<2x128xf32>
    %17 = tpu.matmul %4, %16, %cst_13 {dimension_numbers = #tpu.dot_dimension_numbers<[1], [0], [0], [1], [0, 0, 1, 1], [], []>} : vector<2x16xf32>, vector<16x128xf32>, vector<2x128xf32> -> vector<2x128xf32>
    %18 = arith.addf %17, %5 : vector<2x128xf32>
    %cst_14 = arith.constant 0.000000e+00 : f32
    %19 = vector.broadcast %cst_14 : f32 to vector<2x128xf32>
    %20 = arith.maximumf %18, %19 : vector<2x128xf32>
    %c0_15 = arith.constant 0 : index
    %c0_16 = arith.constant 0 : index
    %21 = vector.load %arg1[%c0_15, %c0_16] : memref<4x128xf32, #tpu.memory_space<vmem>>, vector<4x128xf32>
    %cst_17 = arith.constant dense<0.000000e+00> : vector<8x128xf32>
    %22 = tpu.matmul %6, %21, %cst_17 {dimension_numbers = #tpu.dot_dimension_numbers<[1], [0], [0], [1], [0, 0, 1, 1], [], []>} : vector<8x4xf32>, vector<4x128xf32>, vector<8x128xf32> -> vector<8x128xf32>
    %cst_18 = arith.constant dense<0.000000e+00> : vector<8x128xf32>
    %23 = tpu.matmul %7, %20, %cst_18 {dimension_numbers = #tpu.dot_dimension_numbers<[1], [0], [0], [1], [0, 0, 1, 1], [], []>} : vector<8x2xf32>, vector<2x128xf32>, vector<8x128xf32> -> vector<8x128xf32>
    %24 = arith.addf %22, %23 : vector<8x128xf32>
    %25 = arith.addf %24, %8 : vector<8x128xf32>
    %c0_19 = arith.constant 0 : index
    %c0_20 = arith.constant 0 : index
    %26 = vector.load %arg4[%c0_19, %c0_20] : memref<8x128xf32, #tpu.memory_space<vmem>>, vector<8x128xf32>
    tpu.vector_store %arg4[%c0_19, %c0_20], %25 {strides = array<i32>} : memref<8x128xf32, #tpu.memory_space<vmem>>, vector<8x128xf32>,
    return
  }
  func.func @transform_0(%arg0: i32) -> (i32, i32) {
    %c0_i32 = arith.constant 0 : i32
    %c0_i32_0 = arith.constant 0 : i32
    return %c0_i32, %arg0 : i32, i32
  }
  func.func @transform_1(%arg0: i32) -> (i32, i32) {
    %c0_i32 = arith.constant 0 : i32
    %c0_i32_0 = arith.constant 0 : i32
    return %c0_i32, %arg0 : i32, i32
  }
  func.func @transform_2(%arg0: i32) -> (i32, i32) {
    %c0_i32 = arith.constant 0 : i32
    %c0_i32_0 = arith.constant 0 : i32
    %c0_i32_1 = arith.constant 0 : i32
    return %c0_i32, %c0_i32_0 : i32, i32
  }
  func.func @transform_3(%arg0: i32) -> (i32, i32) {
    %c0_i32 = arith.constant 0 : i32
    %c0_i32_0 = arith.constant 0 : i32
    return %c0_i32, %arg0 : i32, i32
  }
}

</mosaic_0001>

<bundles_post_ra>
// kernel: tpu_custom_call.1
= control target key start
LH: loop header
LB: loop body
LE: loop exit
PB: predicated region body
PF: predicated region fallthrough
CT: control target
= control target key end

     0   :  { %s1019_s0 = inlined_call_operand.hbm [shape: f32[4,256], index: 0, kind: input, shape index: {}]   ;;  %s1020_s1 = inlined_call_operand.hbm [shape: f32[12,256], index: 1, kind: input, shape index: {}]   ;;  %s1021_s2 = inlined_call_operand.hbm [shape: f32[120,128], index: 2, kind: input, shape index: {}]   ;;  %s1022_s3 = inlined_call_operand.hbm [shape: f32[8,256], index: 3, kind: output, shape index: {}]  }
   0x1   :  { %1025 = sst [smem:[#allocation13_spill]] %s1021_s2 }
   0x2   :  { %8 = vsyncpa [#allocation3], 0 }
   0x3   :  { %10 = vsyncpa [#allocation3 + $0x1], 0 }
   0x4   :  { %11 = vsyncpa [#allocation6], 0 }
   0x5   :  { %13 = vsyncpa [#allocation6 + $0x1], 0 }
   0x6   :  { %14 = vsyncpa [#allocation4], 0 }
   0x7   :  { %16 = vsyncpa [#allocation4 + $0x1], 0  ;;  %s833_s12 = smov 0   ;;  %s835_s13 = smov 0  }
   0x8   :  { %s837_s14 = smov 0   ;;  %s839_s15 = smov 0  }
   0x9 LB: > { %s1026_s2 = sld [smem:[#allocation13_spill]]  ;;  %s857_s19 = sadd.s32 4294967295, %s807_s15   ;;  %s807_s15 = sphi %s839_s15, %s1039_s15   ;;  %s803_s14 = sphi %s837_s14, %s1038_s14   ;;  %s799_s13 = sphi %s835_s13, %s1037_s13   ;;  %s795_s12 = sphi %s833_s12, %s1036_s12  }
   0xa   : > { %p542_p0 = scmp.ge.s32.totalorder %s807_s15, 1  ;;  %p43_p1 = scmp.eq.s32.totalorder %s857_s19, 0 }
   0xb   : > { %p126_p2 = scmp.lt.s32.totalorder %s807_s15, 3  ;;  %s809_s21 = smov [#allocation7]  }
   0xc   : > { %s139_s22 = sshll.u32 %s809_s21, 4  ;;  %s1023_s23 = smov 128   ;;  %s140_s22 = int_to_ptr.vmem [resolvable:$true] %s139_s22 }
   0xd   : > { %p862_p3 = pnand %p542_p0, %p126_p2  ;;  %s1024_s24 = smov 8  }
   0xe   : > { %s541_s25 = sadd.s32 4294967294, %s807_s15   ;;  %s876_s26 = sadd.s32 1, %s807_s15  }
   0xf   : > { %s137_s18 = sshll.u32 %s1026_s2, 4  ;;  %p582_p4 = pneg %p862_p3  ;;  %s138_s18 = int_to_ptr.hbm [resolvable:$true] %s137_s18 }
  0x10   : > { %s29_s27 = sadd.s32 1, %s803_s14  ;;  %s26_s28 = ssub.s32 %s807_s15, %s876_s26 }
  0x11   : > { %p583_p6 = pnand %p582_p4, %p43_p1  ;;  %p36_p7 = scmp.ne.s32.totalorder %s803_s14, %s799_s13 }
  0x12   : > { %p27_p8 = scmp.eq.s32.totalorder %s26_s28, 0  ;;  %p37_p9 = scmp.eq.s32.totalorder %s807_s15, 0 }
  0x13   : > { %585 = dma.hbm_to_vmem [thread:$0]  (!%p583_p6), %s138_s18, 1920, %s140_s22, [#allocation6], %s1023_s23, %s1023_s23, %s1024_s24  }
  0x14   : > { %p42_p10 = scmp.ne.s32.totalorder %s799_s13, %s795_s12  ;;  %p113_p11 = scmp.eq.s32.totalorder %s857_s19, 1 }
  0x15   : > { %s888_s29 = scalar_select %p27_p8, %s803_s14, %s29_s27  }
  0x16   : > { %p890_p12 = por %p37_p9, %p36_p7  ;;  %p896_p13 = por %p43_p1, %p42_p10 }
  0x17   : > { %p900_p0 = por %p113_p11, %p36_p7  ;;  %p119_p2 = scmp.eq.s32.totalorder %s541_s25, 1 }
  0x18   : > { %p598_p4 = scmp.lt.s32.totalorder %s807_s15, 2  ;;  %s906_s6 = sand.u32 1, %s803_s14  }
  0x19   : > { %p908_p6 = por %p119_p2, %p42_p10  ;;  %s545_s8 = sshll.u32 %s906_s6, 2 }
  0x1a   : > { %s546_s9 = sshll.u32 %s807_s15, 2  ;;  %s157_s18 = scalar_lea.vmem [#allocation2], %s545_s8 }
  0x1b   : > { %s161_s16 = scalar_lea.hbm %s1019_s0, %s546_s9  ;;  %s165_s21 = sshll.u32 %s157_s18, 4  ;;  %s166_s21 = int_to_ptr.vmem [resolvable:$true] %s165_s21 }
  0x1c   : > { %s163_s17 = sshll.u32 %s161_s16, 4  ;;  %p919_p7 = pnand %p598_p4, %p890_p12  ;;  %s164_s17 = int_to_ptr.hbm [resolvable:$true] %s163_s17 }
  0x1d   : > { %s547_s25 = sshll.u32 %s906_s6, 4  ;;  %s172_s27 = sand.u32 1, %s807_s15  }
  0x1e   : > { %s176_s28 = scalar_lea.vmem [#allocation5], %s547_s25  ;;  %s154_s24 = scalar_lea.sflag [#allocation3], %s906_s6 }
  0x1f   : > { %s183_s23 = sshll.u32 %s176_s28, 4  ;;  %s673_s2 = sshra.s32 %s164_s17, 4  ;;  %s674_s2 = int_to_ptr.hbm [resolvable:$true] %s673_s2  ;;  %s184_s23 = int_to_ptr.vmem [resolvable:$true] %s183_s23 }
  0x20   : > { %s675_s9 = scalar_lea.hbm %s674_s2, 4  ;;  %p677_p9 = pneg %p919_p7 }
  0x21   : > { %p676_p8 = scmp.ne.s32.totalorder %s674_s2, %s675_s9  ;;  %s680_s10 = scalar_lea.hbm %s1019_s0, 8 }
  0x22   : > { %p681_p12 = scmp.lt.s32.totalorder %s674_s2, %s1019_s0  ;;  %p682_p2 = scmp.lt.s32.totalorder %s680_s10, %s675_s9 }
  0x23   : > { %p678_p10 = pnand %p677_p9, %p676_p8 }
  0x24   : > { %p683_p4 = por %p682_p2, %p681_p12 }
  0x25   : > { %p679_p11 = pneg %p678_p10 }
  0x27   : > { %p684_p5 = pnand %p683_p4, %p679_p11 }
  0x29   : > { %687 = shalt.err (!%p684_p5)
}
  0x2a   : > { %589 = dma.hbm_to_vmem [thread:$0]  (!%p919_p7), %s164_s17, 64, %s166_s21, %s154_s24  }
  0x2b   : > { %s548_s6 = sshll.u32 %s807_s15, 3  ;;  %s173_s8 = scalar_lea.sflag [#allocation6], %s172_s27 }
  0x2c   : > { %s180_s28 = scalar_lea.hbm %s1020_s1, %s548_s6  ;;  %s710_s24 = scalar_lea.hbm %s1020_s1, 32 }
  0x2d   : > { %s181_s30 = sshll.u32 %s180_s28, 4  ;;  %s182_s30 = int_to_ptr.hbm [resolvable:$true] %s181_s30 }
  0x2e   : > { %s703_s11 = sshra.s32 %s182_s30, 4  ;;  %s704_s11 = int_to_ptr.hbm [resolvable:$true] %s703_s11 }
  0x2f   : > { %s705_s2 = scalar_lea.hbm %s704_s11, 16  ;;  %p711_p11 = scmp.lt.s32.totalorder %s704_s11, %s1020_s1 }
  0x30   : > { %p706_p8 = scmp.ne.s32.totalorder %s704_s11, %s705_s2  ;;  %p712_p12 = scmp.lt.s32.totalorder %s710_s24, %s705_s2 }
  0x32   : > { %p708_p5 = pnand %p706_p8, %p677_p9  ;;  %p713_p2 = por %p712_p12, %p711_p11 }
  0x34   : > { %p709_p10 = pneg %p708_p5 }
  0x36   : > { %p714_p4 = pnand %p713_p2, %p709_p10 }
  0x38   : > { %717 = shalt.err (!%p714_p4)
}
  0x39   : > { %s812_s27 = smov 256   ;;  %s1033_s16 = smov 8  }
  0x3a   : > { %s1034_s6 = smov 128   ;;  %195 = sbr.rel (%p862_p3) target bundleno = 644 (0x284), region = 32 }
  0x3b   : > { %592 = dma.hbm_to_vmem [thread:$0]  (!%p919_p7), %s182_s30, 256, %s184_s23, %s173_s8, %s812_s27, %s1034_s6, %s1033_s16  }
  0x3c   : > { %s959_s18 = sand.u32 (!%p862_p3), 1, %s799_s13  }
  0x3d   : > { %s550_s25 = sshll.u32 (!%p862_p3), %s959_s18, 2  ;;  %s198_s28 = scalar_lea.sflag (!%p862_p3), [#allocation3], %s959_s18 }
  0x3e   : > { %s963_s11 = scalar_lea.vmem (!%p862_p3), [#allocation2], %s550_s25 }
  0x3f   : > { %778 = dma.done.wait (%p896_p13), %s198_s28, 64  }
  0x40   : > { %780 = vsyncadd (%p896_p13), %s198_s28, 4294967232  ;;  %s207_s20 = sand.u32 1, %s857_s19   ;;  %s551_s23 = sshll.u32 %s959_s18, 4 }
  0x41   : > { %s208_s22 = scalar_lea.sflag [#allocation6], %s207_s20  ;;  %s211_s30 = scalar_lea.vmem [#allocation5], %s551_s23 }
  0x42   : > { %782 = dma.done.wait (%p896_p13), %s208_s22, 256  }
  0x43   : > { %784 = vsyncadd (%p896_p13), %s208_s22, 4294967040 }
  0x44   : > { %786 = dma.done.wait (%p43_p1), [#allocation6], 1920  }
  0x45   : > { %788 = vsyncadd (%p43_p1), [#allocation6], 4294965376  ;;  %vm272_vm0 = vcmask 1043456   ;;  %v261_v0 = vld [vmem:[%s211_s30 + $0x8] sm:$0xf]  ;;  %v260_v1 = vld [vmem:[%s211_s30] sm:$0xff] }
  0x46   : > { %554 = vmatpush.msk.msra.mxu0 %vm272_vm0, %v261_v0  ;;  %570 = vmatpush.msk.msra.mxu2 %vm272_vm0, %v261_v0  ;;  %v245_v2 = vld [vmem:[#allocation7] sm:$0xff]  ;;  %vm262_vm1 = vcmask 97280   ;;  %v247_v3 = vld [vmem:[#allocation7 + $0x10] sm:$0x3]  ;;  %v246_v4 = vld [vmem:[#allocation7 + $0x8] sm:$0xff]  ;;  %vm312_vm2 = vcmask 1041408  }
  0x47   : > { %v250_v6 = vld [vmem:[#allocation7 + $0x28] sm:$0x3]  ;;  %v248_v7 = vld [vmem:[#allocation7 + $0x18] sm:$0xff]  ;;  %v249_v9 = vld [vmem:[#allocation7 + $0x20] sm:$0xff]  ;;  %vm305_vm3 = vcmask 146432   ;;  %vm341_vm4 = vcmask 130048  }
  0x48   : > { %291 = vmatpush.msra.mxu0 %v260_v1  ;;  %571 = vmatpush.msra.mxu2 %v260_v1  ;;  %v251_v16 = vld [vmem:[#allocation7 + $0x30] sm:$0xff]  ;;  %v252_v18 = vld [vmem:[#allocation7 + $0x38] sm:$0xff]  ;;  %v253_v20 = vld [vmem:[#allocation7 + $0x40] sm:$0xff]  ;;  %vm367_vm5 = vcmask 15360   ;;  %vm394_vm6 = vcmask 31744   ;;  %s553_s4 = sshll.u32 %s959_s18, 3 }
  0x49   : > { %555 = vmatmul.msk.f32.vlgmr.msra.gmra.mxu0 %vm262_vm1, %v245_v2  ;;  %557 = vmatmul.msk.f32.vlgmr.msra.gmra.mxu2 %vm262_vm1, %v247_v3  ;;  %v254_v21 = vld [vmem:[#allocation7 + $0x48] sm:$0xff]  ;;  %v255_v27 = vld [vmem:[#allocation7 + $0x50] sm:$0x3]  ;;  %v256_v28 = vld [vmem:[#allocation7 + $0x58] sm:$0x3]  ;;  %s567_s8 = sshll.u32 %s857_s19, 3 }
  0x4a   : > { %v258_v32 = vld [vmem:[#allocation7 + $0x68] sm:$0xff]  ;;  %v366_v33 = vld [vmem:[%s963_s11] sm:$0xf]  ;;  %v257_v34 = vld [vmem:[#allocation7 + $0x60] sm:$0xff]  ;;  %s434_s10 = scalar_lea.hbm %s1022_s3, %s567_s8  ;;  %s244_s24 = scalar_lea.vmem [#allocation8], %s553_s4 }
  0x4b   : > { %v259_v36 = vld [vmem:[#allocation7 + $0x70] sm:$0xff]  ;;  %s436_s17 = sshll.u32 %s244_s24, 4  ;;  %s438_s21 = sshll.u32 %s434_s10, 4  ;;  %s437_s17 = int_to_ptr.vmem [resolvable:$true] %s436_s17  ;;  %s439_s21 = int_to_ptr.hbm [resolvable:$true] %s438_s21 }
  0x4c   : > { %s424_s27 = scalar_lea.sflag [#allocation4], %s959_s18  ;;  %s747_s16 = sshra.s32 %s439_s21, 4  ;;  %s748_s16 = int_to_ptr.hbm [resolvable:$true] %s747_s16 }
  0x4d   : > { %s749_s6 = scalar_lea.hbm %s748_s16, 8  ;;  %s753_s28 = scalar_lea.hbm %s1022_s3, 16 }
  0x4e   : > { %p750_p1 = scmp.ne.s32.totalorder %s748_s16, %s749_s6  ;;  %p754_p7 = scmp.lt.s32.totalorder %s748_s16, %s1022_s3 }
  0x4f   : > { %p755_p9 = scmp.lt.s32.totalorder %s753_s28, %s749_s6 }
  0x50   : > { %p751_p3 = pnand %p750_p1, %p900_p0 }
  0x51   : > { %556 = vmatmul.msk.f32.gmra.mxu0 %vm262_vm1, %v246_v4  ;;  %p756_p8 = por %p755_p9, %p754_p7 }
  0x52   : > { %p752_p13 = pneg %p751_p3 }
  0x54   : > { %p757_p5 = pnand %p756_p8, %p752_p13 }
  0xc6   : > { %v293_v5 = vpop.f32.mrf.mxu0 }
  0xc7   : > { %v294_v12 = vadd.f32 %v293_v5, %v248_v7 }
  0xcc   : > { %v299_v8 = vpop.f32.mrf.mxu2 }
  0xcd   : > { %v300_v10 = vadd.f32 %v299_v8, %v250_v6 }
  0xce   : > { %v296_v11 = vpop.f32.mrf.mxu0 }
  0xcf   : > { %637 = vtanh.f32 %v300_v10  ;;  %v297_v13 = vadd.f32 %v296_v11, %v249_v9 }
  0xd1   : > { %639 = vtanh.f32 %v297_v13 }
  0xd2   : > { %641 = vtanh.f32 %v294_v12 }
  0xd5   : > { %v638_v14 = vpop.eup %637 }
  0xd6   : > { %558 = vmatpush.msk.msra.mxu1 %vm312_vm2, %v638_v14 }
  0xd7   : > { %v640_v15 = vpop.eup %639 }
  0xd8   : > { %330 = vmatpush.msra.mxu1 %v640_v15  ;;  %v642_v17 = vpop.eup %641 }
  0xda   : > { %331 = vmatpush.msra.mxu1 %v642_v17 }
  0xdb   : > { %559 = vmatmul.msk.f32.vlgmr.msra.gmra.mxu1 %vm305_vm3, %v251_v16 }
  0xe3   : > { %560 = vmatmul.msk.f32.gmra.mxu1 %vm305_vm3, %v252_v18 }
 0x158   : > { %v333_v19 = vpop.f32.mrf.mxu1 }
 0x159   : > { %v334_v23 = vadd.f32 %v333_v19, %v253_v20 }
 0x15b   : > { %v339_v26 = vmax.f32 %v334_v23, 0.0 }
 0x160   : > { %v336_v22 = vpop.f32.mrf.mxu1 }
 0x161   : > { %v337_v24 = vadd.f32 %v336_v22, %v254_v21 }
 0x163   : > { %v340_v25 = vmax.f32 %v337_v24, 0.0 }
 0x165   : > { %359 = vmatpush.msrb.mxu2 %v340_v25 }
 0x167   : > { %360 = vmatpush.msrb.mxu2 %v339_v26 }
 0x168   : > { %561 = vmatmul.msk.f32.vlgmr.msrb.gmra.mxu2 %vm341_vm4, %v255_v27 }
 0x1eb   : > { %v362_v29 = vpop.f32.mrf.mxu2 }
 0x1ec   : > { %v363_v30 = vadd.f32 %v362_v29, %v256_v28 }
 0x1ee   : > { %v365_v31 = vmax.f32 %v363_v30, 0.0 }
 0x1f0   : > { %562 = vmatpush.msk.msra.mxu3 %vm312_vm2, %v365_v31 }
 0x1f1   : > { %563 = vmatmul.msk.f32.vlgmr.msra.gmra.mxu3 %vm367_vm5, %v258_v32 }
 0x1f2   : > { %564 = vmatpush.msk.msrb.mxu3 %vm272_vm0, %v366_v33 }
 0x1f9   : > { %565 = vmatmul.msk.f32.vlgmr.msrb.gmra.mxu3 %vm394_vm6, %v257_v34 }
 0x274   : > { %v391_v35 = vpop.f32.mrf.mxu3 }
 0x27c   : > { %v418_v37 = vpop.f32.mrf.mxu3 }
 0x27d   : > { %v419_v38 = vadd.f32 %v418_v37, %v391_v35 }
 0x27f   : > { %v421_v39 = vadd.f32 %v419_v38, %v259_v36 }
 0x281   : > { %422 = vst [vmem:[%s244_s24] sm:$0xff] %v421_v39 }
 0x282   : > { %760 = shalt.err (!%p757_p5)
}
 0x283   : > { %580 = dma.vmem_to_hbm [thread:$0]  (%p900_p0), %s437_s17, 128, %s439_s21, %s424_s27  }
 0x284 PF: > { %s450_s18 = sand.u32 1, %s795_s12   ;;  %p1035_p10 = scmp.ge.s32.totalorder %s807_s15, 2 }
 0x285   : > { %s451_s23 = scalar_lea.sflag [#allocation4], %s450_s18 }
 0x286   : > { %p594_p11 = pnand %p1035_p10, %p908_p6 }
 0x288   : > { %p595_p12 = pneg %p594_p11 }
 0x28a   : > { %790 = dma.done.wait (%p595_p12), %s451_s23, 128  }
 0x28b   : > { %792 = vsyncadd (%p595_p12), %s451_s23, 4294967168  ;;  %p19_p2 = scmp.ge.s32.totalorder %s876_s26, 4   ;;  %s1036_s12 = smov %s799_s13 }
 0x28c   : > { %s1037_s13 = smov %s803_s14  ;;  %s1038_s14 = smov %s888_s29 }
 0x28d   : > { %s1039_s15 = smov %s876_s26  ;;  %21 = sbr.rel (!%p19_p2) target bundleno = 9 (0x9), region = 94 }
 0x292   :  { %457 = vsyncpa [#allocation3], 1 }
 0x293   :  { %459 = vsyncpa [#allocation3 + $0x1], 1 }
 0x294   :  { %460 = vsyncpa [#allocation6], 1 }
 0x295   :  { %462 = vsyncpa [#allocation6 + $0x1], 1 }
 0x296   :  { %463 = vsyncpa [#allocation4], 1 }
 0x297   :  { %465 = vsyncpa [#allocation4 + $0x1], 1 }

</bundles_post_ra>
